<compile_context>
chip_gen: v7x
topology: tpu7x:2x2x1
jax: 0.10.0
libtpu: 0.0.40
codegen_flags: <defaults>
</compile_context>

<pallas_src>
import math

import numpy as np
import jax
import jax.numpy as jnp
from jax.experimental import pallas as pl
from jax.experimental.pallas import tpu as pltpu


def _round_up(x, m):
    return ((x + m - 1) // m) * m


def _is_pow2(v):
    return v > 0 and (v & (v - 1)) == 0


# ---------------------------------------------------------------------------
# host-side helpers (data dependent shapes -> numpy glue)
# ---------------------------------------------------------------------------
def get_inner_win_inds_np(win_inds):
    """Index of each voxel inside its window (0..count-1), stable order."""
    win_inds = np.asarray(win_inds)
    order = np.argsort(win_inds, kind="stable")
    sorted_w = win_inds[order]
    first_occ = np.searchsorted(sorted_w, sorted_w, side="left")
    inner_sorted = np.arange(len(win_inds)) - first_occ
    inner = np.empty_like(win_inds)
    inner[order] = inner_sorted
    return inner


def get_flat2win_inds_np(batch_win_inds, batching_lvl, batching_info):
    """Per batching-level flat -> (window, token) transform info."""
    out = {"voxel_batching_level": np.asarray(batching_lvl)}
    levels = {}
    for dl in batching_info:
        m = np.asarray(batching_lvl) == dl
        if not m.any():
            continue
        w = np.asarray(batch_win_inds)[m]
        uniq, conti = np.unique(w, return_inverse=True)
        inner = get_inner_win_inds_np(conti)
        max_tokens = batching_info[dl]["max_tokens"]
        flat_inds = conti * max_tokens + inner
        levels[dl] = dict(
            flat_inds=flat_inds,
            voxel_mask=m,
            num_windows=len(uniq),
            max_tokens=max_tokens,
        )
    out["levels"] = levels
    return out


# ---------------------------------------------------------------------------
# Pallas kernel 1: window partition
# layout: input [4, TL] int32 (rows = b, z, y, x); output [8, TL] int32:
#   row 0/1   = batch_win_inds shift0 / shift1      (int32, exact)
#   rows 2..4 = coors_in_win shift0 (z, y, x)
#   rows 5..7 = coors_in_win shift1 (z, y, x)
# One full [8, TL] store per grid step; gridded over the lane axis.
# ---------------------------------------------------------------------------
def make_window_partition_kernel(window_shape, sparse_shape):
    if len(window_shape) == 2:
        win_x, win_y = window_shape
        win_z = sparse_shape[-1]
    else:
        win_x, win_y, win_z = window_shape
    ss_x, ss_y, ss_z = sparse_shape
    mwx = int(math.ceil(ss_x / win_x)) + 1
    mwy = int(math.ceil(ss_y / win_y)) + 1
    mwz = int(math.ceil(ss_z / win_z)) + 1
    max_win_per_sample = mwx * mwy * mwz

    all_pow2 = _is_pow2(win_x) and _is_pow2(win_y) and _is_pow2(win_z)
    if all_pow2:
        lgx, lgy, lgz = int(math.log2(win_x)), int(math.log2(win_y)), int(math.log2(win_z))
    rx, ry, rz = 1.0 / float(win_x), 1.0 / float(win_y), 1.0 / float(win_z)

    def kernel(c_ref, o_ref):
        b = c_ref[0:1, :]
        z = c_ref[1:2, :]
        y = c_ref[2:3, :]
        x = c_ref[3:4, :]
        if not all_pow2:
            # hoist int->f32 conversions out of the 2-shift unrolled loop
            xf = x.astype(jnp.float32)
            yf = y.astype(jnp.float32)
            zf = z.astype(jnp.float32)
        rows = [None] * 8
        for s in range(2):          # static unroll: shift0 / shift1
            if s == 0:
                sx, sy, sz = win_x, win_y, win_z
            else:
                sx, sy, sz = win_x // 2, win_y // 2, win_z // 2
            if ss_z == win_z:
                sz = 0
            shx = x + sx            # int32, exact
            shy = y + sy
            shz = z + sz
            if all_pow2:
                # exact integer shift/mask path
                wx = shx >> lgx
                wy = shy >> lgy
                wz = shz >> lgz
                cx = shx & (win_x - 1)
                cy = shy & (win_y - 1)
                cz = shz & (win_z - 1)
            else:
                # floor-div by multiply with reciprocal; +0.5 keeps the floor
                # robust to 1-ulp error (coords are small nonneg ints, exact f32)
                wx = jnp.floor((xf + (sx + 0.5)) * rx).astype(jnp.int32)
                wy = jnp.floor((yf + (sy + 0.5)) * ry).astype(jnp.int32)
                wz = jnp.floor((zf + (sz + 0.5)) * rz).astype(jnp.int32)
                cx = shx - wx * win_x
                cy = shy - wy * win_y
                cz = shz - wz * win_z
            rows[s] = (b * max_win_per_sample
                       + wx * (mwy * mwz) + wy * mwz + wz)   # exact int32
            rows[2 + 3 * s] = cz
            rows[3 + 3 * s] = cy
            rows[4 + 3 * s] = cx
        o_ref[...] = jnp.concatenate(rows, axis=0)

    return kernel


# ---------------------------------------------------------------------------
# Pallas kernel 2: fused sinusoidal positional embedding + window layout.
# Input rows are already in window order (host gathered the [M,3] coords);
# column 3 is a validity flag (0 for empty window slots -> output row is 0).
# out[:, d] = sin( coord_axis(d) * rinv[d] + phase[d] ) * valid
#   phase = 0 for sin columns, pi/2 for cos columns, 0 in pad columns.
# Lane-dense stores ([TR, Epad], Epad multiple of 128); single sin on the EUP.
# ---------------------------------------------------------------------------
def make_pos_embed_kernel(win_x, win_y, win_z, normalize_pos):
    # guard: flat-z (2D) windows must not divide by zero under normalize_pos
    sc_x = (2.0 * 3.1415 / float(win_x)) if win_x > 0 else 0.0
    sc_y = (2.0 * 3.1415 / float(win_y)) if win_y > 0 else 0.0
    sc_z = (2.0 * 3.1415 / float(win_z)) if win_z > 0 else 0.0

    def kernel(c_ref, t_ref, o_ref):
        z = c_ref[:, 0:1] - win_z / 2.0
        y = c_ref[:, 1:2] - win_y / 2.0
        x = c_ref[:, 2:3] - win_x / 2.0
        valid = c_ref[:, 3:4]
        if normalize_pos:
            x = x * sc_x
            y = y * sc_y
            z = z * sc_z
        ax = t_ref[0:1, :]        # 0 -> x, 1 -> y, 2 -> z
        rinv = t_ref[1:2, :]      # 1 / inv_freq (0 in pad columns)
        phase = t_ref[2:3, :]     # 0 (sin) / pi/2 (cos) (0 in pad columns)
        coord = jnp.where(ax == 0.0, x, jnp.where(ax == 1.0, y, z))  # [TR,Epad]
        emb = coord * rinv + phase
        o_ref[...] = (jnp.sin(emb) * valid).astype(o_ref.dtype)

    return kernel


# ---------------------------------------------------------------------------
# The layer
# ---------------------------------------------------------------------------
class SparseWindowPartitionLayerPallas:
    def __init__(self, batching_info, window_shape, sparse_shape,
                 normalize_pos=False, pos_temperature=1000):
        self.batching_info = batching_info
        self.window_shape = window_shape
        self.sparse_shape = sparse_shape
        self.normalize_pos = normalize_pos
        self.pos_temperature = pos_temperature
        self._wp_kernel = make_window_partition_kernel(window_shape, sparse_shape)

        # pos-embed window convention (differs from partition: 2D -> win_z = 0)
        if len(window_shape) == 2:
            self._pe_ndim = 2
            pe_wx, pe_wy = window_shape
            pe_wz = 0
        elif window_shape[-1] == 1:
            self._pe_ndim = 2
            pe_wx, pe_wy = window_shape[:2]
            pe_wz = 0
        else:
            pe_wx, pe_wy, pe_wz = window_shape
            self._pe_ndim = 3
        self._pe_win = (pe_wx, pe_wy, pe_wz)
        self._pe_kernel = make_pos_embed_kernel(pe_wx, pe_wy, pe_wz, normalize_pos)

    # ---- Pallas-backed window partition (gridded over the lane axis) ----
    def window_partition(self, coords_np):
        N = coords_np.shape[0]
        TL = 8192 if N >= 8192 else max(_round_up(N, 128), 128)
        Npad = _round_up(max(N, 1), TL)
        ct = np.zeros((4, Npad), np.int32)
        ct[:, :N] = coords_np.T.astype(np.int32)
        out = pl.pallas_call(
            self._wp_kernel,
            out_shape=jax.ShapeDtypeStruct((8, Npad), jnp.int32),
            grid=(Npad // TL,),
            in_specs=[pl.BlockSpec((4, TL), lambda i: (0, i))],
            out_specs=pl.BlockSpec((8, TL), lambda i: (0, i)),
            compiler_params=pltpu.CompilerParams(
                dimension_semantics=("parallel",)),
        )(jnp.asarray(ct))
        out = np.asarray(out)[:, :N]   # single host sync (needed for batching glue)
        info = {}
        for s in range(2):
            info[f"batch_win_inds_shift{s}"] = out[s].astype(np.int64)
            info[f"coors_in_win_shift{s}"] = out[2 + 3 * s:5 + 3 * s].T.astype(np.int64)
        return info

    # ---- batching (voxel dropping) -- dynamic shapes, host glue ----
    # TODO(synk): unique/bincount/stable-argsort/compaction produce dynamic
    # shapes and stay on host (no clean Pallas equivalent).
    def _batching_single_shift(self, batch_win_inds):
        lvl = -np.ones_like(batch_win_inds)
        inner = get_inner_win_inds_np(batch_win_inds)
        bincount = np.bincount(batch_win_inds)
        num_per_voxel = bincount[batch_win_inds]
        target = np.zeros_like(batch_win_inds)
        for bl in self.batching_info:
            max_tokens = self.batching_info[bl]["max_tokens"]
            lower, upper = self.batching_info[bl]["batching_range"]
            m = (num_per_voxel >= lower) & (num_per_voxel < upper)
            target[m] = max_tokens
            lvl[m] = bl
        keep = inner < target
        return keep, lvl

    def batching_voxel(self, voxel_info):
        bwi0 = voxel_info["batch_win_inds_shift0"]
        num_all = bwi0.shape[0]
        keep_inds = np.arange(num_all)
        keep0, lvl0 = self._batching_single_shift(bwi0)
        lvl0 = lvl0[keep0]; keep_inds = keep_inds[keep0]; bwi0 = bwi0[keep0]
        bwi1 = voxel_info["batch_win_inds_shift1"][keep0]
        keep1, lvl1 = self._batching_single_shift(bwi1)
        lvl0 = lvl0[keep1]; keep_inds = keep_inds[keep1]; bwi0 = bwi0[keep1]
        lvl1 = lvl1[keep1]; bwi1 = bwi1[keep1]

        voxel_info["voxel_keep_inds"] = keep_inds
        voxel_info["voxel_batching_level_shift0"] = lvl0
        voxel_info["batch_win_inds_shift0"] = bwi0
        voxel_info["voxel_batching_level_shift1"] = lvl1
        voxel_info["batch_win_inds_shift1"] = bwi1

        n_before = len(voxel_info["voxel_coords"])
        voxel_info["voxel_features"] = np.asarray(voxel_info["voxel_features"])[keep_inds]
        voxel_info["voxel_coords"] = np.asarray(voxel_info["voxel_coords"])[keep_inds]
        for k, v in list(voxel_info.items()):
            if isinstance(v, np.ndarray) and len(v) == n_before:
                voxel_info[k] = v[keep_inds]
        return voxel_info

    # ---- host-precomputed tables for the pos-embed kernel ----
    def _pos_table(self, feat_dim):
        ndim = self._pe_ndim
        pos_length = feat_dim // ndim
        E = ndim * pos_length
        Epad = max(_round_up(E, 128), 128)
        j = np.arange(pos_length, dtype=np.float64)
        inv_freq = self.pos_temperature ** (2.0 * np.floor(j / 2.0) / pos_length)
        d = np.arange(E)
        table = np.zeros((3, Epad), np.float32)            # pad cols: rinv=phase=0 -> sin(0)=0
        table[0, :E] = (d // pos_length).astype(np.float32)
        table[1, :E] = (1.0 / inv_freq[d % pos_length]).astype(np.float32)
        table[2, :E] = np.where((d % pos_length) % 2 == 0,
                                0.0, np.pi / 2.0).astype(np.float32)  # cos(x)=sin(x+pi/2)
        return E, Epad, table

    # ---- fused pos-embed + flat->window layout (one kernel per level) ----
    def _pos_embed_windows(self, coors_in_win, inds_dict, E, Epad, table_dev, out_dtype):
        win_x, win_y, _ = self._pe_win
        x_off = coors_in_win[:, 2] - win_x / 2
        assert (x_off >= -win_x / 2 - 1e-4).all()
        assert (x_off <= win_x / 2 - 1 + 1e-4).all()

        out = {}
        for dl, info in inds_dict["levels"].items():
            R, T = info["num_windows"], info["max_tokens"]
            M = R * T
            TR = 2048 if M >= 2048 else max(_round_up(M, 8), 8)
            Mp = _round_up(M, TR)
            # host gather of the tiny [M,3] coords into window order + valid flag
            c = np.zeros((Mp, 4), np.float32)
            c[info["flat_inds"], 0:3] = coors_in_win[info["voxel_mask"]].astype(np.float32)
            c[info["flat_inds"], 3] = 1.0
            win = pl.pallas_call(
                self._pe_kernel,
                out_shape=jax.ShapeDtypeStruct((Mp, Epad), out_dtype),
                grid=(Mp // TR,),
                in_specs=[pl.BlockSpec((TR, 4), lambda i: (i, 0)),
                          pl.BlockSpec((3, Epad), lambda i: (0, 0))],
                out_specs=pl.BlockSpec((TR, Epad), lambda i: (i, 0)),
                compiler_params=pltpu.CompilerParams(
                    dimension_semantics=("parallel",)),
            )(jnp.asarray(c), table_dev)
            # TODO(synk): downstream consumers could keep the lane-dense padded
            # [R*T, Epad] layout and skip this extra slice+reshape pass.
            out[dl] = win[:M, :E].reshape(R, T, E)
        return out

    def _key_padding_mask(self, inds_dict):
        # trivial boolean bookkeeping kept on host (scatter of ones)
        out = {}
        for dl, info in inds_dict["levels"].items():
            R, T = info["num_windows"], info["max_tokens"]
            occ = np.zeros(R * T, dtype=bool)
            occ[info["flat_inds"]] = True
            out[dl] = jnp.asarray(~occ.reshape(R, T))  # True where padding
        return out

    # ---- forward ----
    def __call__(self, voxel_features, voxel_coords):
        voxel_features = np.asarray(voxel_features)
        voxel_coords = np.asarray(voxel_coords).astype(np.int64)

        voxel_info = self.window_partition(voxel_coords)
        voxel_info["voxel_features"] = voxel_features
        voxel_info["voxel_coords"] = voxel_coords
        voxel_info = self.batching_voxel(voxel_info)

        feat_dim = voxel_info["voxel_features"].shape[1]
        out_dtype = voxel_info["voxel_features"].dtype  # e.g. bf16 halves HBM traffic
        voxel_info["voxel_features"] = jnp.asarray(voxel_info["voxel_features"])

        E, Epad, table = self._pos_table(feat_dim)
        table_dev = jnp.asarray(table)

        for i in range(2):
            ind = get_flat2win_inds_np(
                voxel_info[f"batch_win_inds_shift{i}"],
                voxel_info[f"voxel_batching_level_shift{i}"],
                self.batching_info)
            voxel_info[f"flat2win_inds_shift{i}"] = ind
            voxel_info[f"pos_dict_shift{i}"] = self._pos_embed_windows(
                np.asarray(voxel_info[f"coors_in_win_shift{i}"]), ind,
                E, Epad, table_dev, out_dtype)
            voxel_info[f"key_mask_shift{i}"] = self._key_padding_mask(ind)
        return voxel_info


# ---------------------------------------------------------------------------
if __name__ == "__main__":
    key = jax.random.PRNGKey(0)
    ks = jax.random.split(key, 9)

    C = 48                      # feature dim (divisible by ndim=3)
    sparse_shape = (16, 16, 8)  # (x, y, z)
    window_shape = (4, 4, 4)
    batching_info = {
        0: dict(max_tokens=16, batching_range=(0, 16)),
        1: dict(max_tokens=64, batching_range=(16, 100000)),
    }

    # 80 clustered voxels (one dense window -> batching level 1) + 120 random.
    n_cluster, n_rand = 80, 120
    N = n_cluster + n_rand
    cz = jax.random.randint(ks[0], (n_cluster,), 0, 4)
    cy = jax.random.randint(ks[1], (n_cluster,), 0, 4)
    cx = jax.random.randint(ks[2], (n_cluster,), 0, 4)
    cb = jnp.zeros((n_cluster,), jnp.int32)
    rb = jax.random.randint(ks[3], (n_rand,), 0, 2)
    rz = jax.random.randint(ks[4], (n_rand,), 0, sparse_shape[2])
    ry = jax.random.randint(ks[5], (n_rand,), 0, sparse_shape[1])
    rx = jax.random.randint(ks[6], (n_rand,), 0, sparse_shape[0])

    coords = jnp.concatenate(
        [jnp.stack([cb, cz, cy, cx], axis=1),
         jnp.stack([rb, rz, ry, rx], axis=1)], axis=0).astype(jnp.int32)
    feats = jax.random.normal(ks[7], (N, C), jnp.float32)

    layer = SparseWindowPartitionLayerPallas(batching_info, window_shape, sparse_shape)
    voxel_info = layer(feats, coords)

    # block on every device result
    for leaf in jax.tree_util.tree_leaves(voxel_info):
        if isinstance(leaf, jax.Array):
            jax.block_until_ready(leaf)

    print("KERNEL_OK")
</pallas_src>

<mosaic_0001>
module attributes {stable_mosaic.version = 11 : i64} {
  func.func @kernel(%arg0: i32, %arg1: memref<4x256xi32, #tpu.memory_space<vmem>>, %arg2: memref<8x256xi32, #tpu.memory_space<vmem>>) attributes {dimension_semantics = [#tpu.dimension_semantics<parallel>], iteration_bounds = array<i64: 1>, scalar_prefetch = 0 : i64, scratch_operands = 0 : i64, tpu.core_type = #tpu.core_type<tc>, window_params = [{transform_indices = @transform_0, window_bounds = array<i64: 4, 256>}, {transform_indices = @transform_1, window_bounds = array<i64: 8, 256>}]} {
    %c0 = arith.constant 0 : index
    %c0_0 = arith.constant 0 : index
    %0 = vector.load %arg1[%c0, %c0_0] : memref<4x256xi32, #tpu.memory_space<vmem>>, vector<1x256xi32>
    %c1 = arith.constant 1 : index
    %c0_1 = arith.constant 0 : index
    %1 = vector.load %arg1[%c1, %c0_1] : memref<4x256xi32, #tpu.memory_space<vmem>>, vector<1x256xi32>
    %c2 = arith.constant 2 : index
    %c0_2 = arith.constant 0 : index
    %2 = vector.load %arg1[%c2, %c0_2] : memref<4x256xi32, #tpu.memory_space<vmem>>, vector<1x256xi32>
    %c3 = arith.constant 3 : index
    %c0_3 = arith.constant 0 : index
    %3 = vector.load %arg1[%c3, %c0_3] : memref<4x256xi32, #tpu.memory_space<vmem>>, vector<1x256xi32>
    %c4_i32 = arith.constant 4 : i32
    %4 = vector.broadcast %c4_i32 : i32 to vector<1x256xi32>
    %5 = arith.addi %3, %4 : vector<1x256xi32>
    %c4_i32_4 = arith.constant 4 : i32
    %6 = vector.broadcast %c4_i32_4 : i32 to vector<1x256xi32>
    %7 = arith.addi %2, %6 : vector<1x256xi32>
    %c4_i32_5 = arith.constant 4 : i32
    %8 = vector.broadcast %c4_i32_5 : i32 to vector<1x256xi32>
    %9 = arith.addi %1, %8 : vector<1x256xi32>
    %c2_i32 = arith.constant 2 : i32
    %10 = vector.broadcast %c2_i32 : i32 to vector<1x256xi32>
    %11 = arith.shrsi %5, %10 : vector<1x256xi32>
    %c2_i32_6 = arith.constant 2 : i32
    %12 = vector.broadcast %c2_i32_6 : i32 to vector<1x256xi32>
    %13 = arith.shrsi %7, %12 : vector<1x256xi32>
    %c2_i32_7 = arith.constant 2 : i32
    %14 = vector.broadcast %c2_i32_7 : i32 to vector<1x256xi32>
    %15 = arith.shrsi %9, %14 : vector<1x256xi32>
    %c3_i32 = arith.constant 3 : i32
    %16 = vector.broadcast %c3_i32 : i32 to vector<1x256xi32>
    %17 = arith.andi %5, %16 : vector<1x256xi32>
    %c3_i32_8 = arith.constant 3 : i32
    %18 = vector.broadcast %c3_i32_8 : i32 to vector<1x256xi32>
    %19 = arith.andi %7, %18 : vector<1x256xi32>
    %c3_i32_9 = arith.constant 3 : i32
    %20 = vector.broadcast %c3_i32_9 : i32 to vector<1x256xi32>
    %21 = arith.andi %9, %20 : vector<1x256xi32>
    %c75_i32 = arith.constant 75 : i32
    %22 = vector.broadcast %c75_i32 : i32 to vector<1x256xi32>
    %23 = arith.muli %0, %22 : vector<1x256xi32>
    %c15_i32 = arith.constant 15 : i32
    %24 = vector.broadcast %c15_i32 : i32 to vector<1x256xi32>
    %25 = arith.muli %11, %24 : vector<1x256xi32>
    %26 = arith.addi %23, %25 : vector<1x256xi32>
    %c3_i32_10 = arith.constant 3 : i32
    %27 = vector.broadcast %c3_i32_10 : i32 to vector<1x256xi32>
    %28 = arith.muli %13, %27 : vector<1x256xi32>
    %29 = arith.addi %26, %28 : vector<1x256xi32>
    %30 = arith.addi %29, %15 : vector<1x256xi32>
    %c2_i32_11 = arith.constant 2 : i32
    %31 = vector.broadcast %c2_i32_11 : i32 to vector<1x256xi32>
    %32 = arith.addi %3, %31 : vector<1x256xi32>
    %c2_i32_12 = arith.constant 2 : i32
    %33 = vector.broadcast %c2_i32_12 : i32 to vector<1x256xi32>
    %34 = arith.addi %2, %33 : vector<1x256xi32>
    %c2_i32_13 = arith.constant 2 : i32
    %35 = vector.broadcast %c2_i32_13 : i32 to vector<1x256xi32>
    %36 = arith.addi %1, %35 : vector<1x256xi32>
    %c2_i32_14 = arith.constant 2 : i32
    %37 = vector.broadcast %c2_i32_14 : i32 to vector<1x256xi32>
    %38 = arith.shrsi %32, %37 : vector<1x256xi32>
    %c2_i32_15 = arith.constant 2 : i32
    %39 = vector.broadcast %c2_i32_15 : i32 to vector<1x256xi32>
    %40 = arith.shrsi %34, %39 : vector<1x256xi32>
    %c2_i32_16 = arith.constant 2 : i32
    %41 = vector.broadcast %c2_i32_16 : i32 to vector<1x256xi32>
    %42 = arith.shrsi %36, %41 : vector<1x256xi32>
    %c3_i32_17 = arith.constant 3 : i32
    %43 = vector.broadcast %c3_i32_17 : i32 to vector<1x256xi32>
    %44 = arith.andi %32, %43 : vector<1x256xi32>
    %c3_i32_18 = arith.constant 3 : i32
    %45 = vector.broadcast %c3_i32_18 : i32 to vector<1x256xi32>
    %46 = arith.andi %34, %45 : vector<1x256xi32>
    %c3_i32_19 = arith.constant 3 : i32
    %47 = vector.broadcast %c3_i32_19 : i32 to vector<1x256xi32>
    %48 = arith.andi %36, %47 : vector<1x256xi32>
    %c75_i32_20 = arith.constant 75 : i32
    %49 = vector.broadcast %c75_i32_20 : i32 to vector<1x256xi32>
    %50 = arith.muli %0, %49 : vector<1x256xi32>
    %c15_i32_21 = arith.constant 15 : i32
    %51 = vector.broadcast %c15_i32_21 : i32 to vector<1x256xi32>
    %52 = arith.muli %38, %51 : vector<1x256xi32>
    %53 = arith.addi %50, %52 : vector<1x256xi32>
    %c3_i32_22 = arith.constant 3 : i32
    %54 = vector.broadcast %c3_i32_22 : i32 to vector<1x256xi32>
    %55 = arith.muli %40, %54 : vector<1x256xi32>
    %56 = arith.addi %53, %55 : vector<1x256xi32>
    %57 = arith.addi %56, %42 : vector<1x256xi32>
    %58 = tpu.concatenate %30, %57, %21, %19, %17, %48, %46, %44 in 0 : vector<1x256xi32>, vector<1x256xi32>, vector<1x256xi32>, vector<1x256xi32>, vector<1x256xi32>, vector<1x256xi32>, vector<1x256xi32>, vector<1x256xi32> -> vector<8x256xi32>
    %c0_23 = arith.constant 0 : index
    %c0_24 = arith.constant 0 : index
    %59 = vector.load %arg2[%c0_23, %c0_24] : memref<8x256xi32, #tpu.memory_space<vmem>>, vector<8x256xi32>
    tpu.vector_store %arg2[%c0_23, %c0_24], %58 {strides = array<i32>} : memref<8x256xi32, #tpu.memory_space<vmem>>, vector<8x256xi32>,
    return
  }
  func.func @transform_0(%arg0: i32) -> (i32, i32) {
    %c0_i32 = arith.constant 0 : i32
    %c0_i32_0 = arith.constant 0 : i32
    return %c0_i32, %arg0 : i32, i32
  }
  func.func @transform_1(%arg0: i32) -> (i32, i32) {
    %c0_i32 = arith.constant 0 : i32
    %c0_i32_0 = arith.constant 0 : i32
    return %c0_i32, %arg0 : i32, i32
  }
}

</mosaic_0001>

<bundles_post_ra>
// kernel: tpu_custom_call.1
= control target key start
LH: loop header
LB: loop body
LE: loop exit
PB: predicated region body
PF: predicated region fallthrough
CT: control target
= control target key end

     0   :  { %6 = vsyncpa [#allocation3], 0  ;;  %s257_s0 = inlined_call_operand.hbm [shape: s32[4,256], index: 0, kind: input, shape index: {}]   ;;  %s258_s1 = inlined_call_operand.hbm [shape: s32[8,256], index: 1, kind: output, shape index: {}]  }
   0x1   :  { %7 = vsyncpa [#allocation4], 0  ;;  %s209_s6 = smov [#allocation2]   ;;  %s161_s10 = scalar_lea.hbm %s257_s0, 128 }
   0x2   :  { %s14_s7 = sshll.u32 %s209_s6, 4  ;;  %p162_p0 = scmp.ne.s32.totalorder %s257_s0, %s161_s10  ;;  %s15_s7 = int_to_ptr.vmem [resolvable:$true] %s14_s7 }
   0x3   :  { %p165_p1 = scmp.lt.u32.totalorder %s161_s10, %s257_s0 }
   0x5   :  { %p167_p2 = pnand %p165_p1, %p162_p0 }
   0x7   :  { %170 = shalt.err (!%p167_p2)
}
   0x8   :  { %s171_s15 = scalar_lea.vmem %s15_s7, 128  ;;  %p176_p4 = scmp.lt.s32.totalorder %s15_s7, %s15_s7 }
   0x9   :  { %p172_p3 = scmp.ne.s32.totalorder %s15_s7, %s171_s15  ;;  %p177_p5 = scmp.lt.s32.totalorder %s171_s15, %s171_s15 }
   0xb   :  { %p178_p6 = por %p177_p5, %p176_p4 }
   0xd   :  { %p179_p7 = pnand %p178_p6, %p172_p3 }
   0xf   :  { %182 = shalt.err (!%p179_p7)
}
  0x10   :  { %17 = dma.hbm_to_vmem [thread:$0]  %s257_s0, 128, %s15_s7, [#allocation3]  }
  0x11   :  { %205 = dma.done.wait [#allocation3], 128  }
  0x12   :  { %206 = vsyncadd [#allocation3], 4294967168  ;;  %v21_v0 = vld [vmem:[#allocation2] ss:$4 sm:$0x3]  ;;  %v57_v6 = vlaneseq  ;;  %vm121_vm0 = vcmask 1040384  }
  0x13   :  { %v23_v1 = vld [vmem:[#allocation2 + $0x1] ss:$4 sm:$0x3]  ;;  %v25_v2 = vld [vmem:[#allocation2 + $0x2] ss:$4 sm:$0x3] }
  0x14   :  { %v27_v3 = vld [vmem:[#allocation2 + $0x3] ss:$4 sm:$0x3]  ;;  %v29_v5 = vadd.s32 4, %v25_v2  ;;  %v44_v8 = vadd.s32 2, %v25_v2  ;;  %v30_v9 = vadd.s32 4, %v23_v1 }
  0x15   :  { %v28_v4 = vadd.s32 4, %v27_v3  ;;  %v43_v7 = vadd.s32 2, %v27_v3  ;;  %v37_v12 = vmul.u32 75, %v21_v0  ;;  %v45_v13 = vadd.s32 2, %v23_v1  ;;  %s210_s0 = smov [#allocation5]  }
  0x16   :  { %v32_v11 = vshra.s32 %v29_v5, 2  ;;  %v47_v15 = vshra.s32 %v44_v8, 2  ;;  %v58_v18 = vshrl.u32 %v57_v6, 7  ;;  %v33_v21 = vshra.s32 %v30_v9, 2  ;;  %s150_s18 = sshll.u32 %s210_s0, 4  ;;  %s151_s18 = int_to_ptr.vmem [resolvable:$true] %s150_s18 }
  0x17   :  { %v31_v10 = vshra.s32 %v28_v4, 2  ;;  %v46_v14 = vshra.s32 %v43_v7, 2  ;;  %v48_v23 = vshra.s32 %v45_v13, 2  ;;  %v36_v25 = vand.u32 3, %v30_v9  ;;  %s183_s19 = scalar_lea.vmem %s151_s18, 256  ;;  %p188_p9 = scmp.lt.s32.totalorder %s151_s18, %s151_s18 }
  0x18   :  { %v40_v17 = vmul.u32 3, %v32_v11  ;;  %v54_v20 = vmul.u32 3, %v47_v15  ;;  %v59_v27 = vsub.s32 0, %v58_v18  ;;  %v63_v28 = vsub.s32 1, %v58_v18  ;;  %p184_p8 = scmp.ne.s32.totalorder %s151_s18, %s183_s19  ;;  %p189_p10 = scmp.lt.s32.totalorder %s183_s19, %s183_s19 }
  0x19   :  { %v38_v16 = vmul.u32 15, %v31_v10  ;;  %v52_v19 = vmul.u32 15, %v46_v14  ;;  %v35_v29 = vand.u32 3, %v29_v5  ;;  %vm124_vm1 = vcmask 1041408  }
  0x1a   :  { %v34_v31 = vand.u32 3, %v28_v4  ;;  %vm127_vm2 = vcmask 1042432   ;;  %vm130_vm3 = vcmask 1043456   ;;  %v49_v33 = vand.u32 3, %v43_v7  ;;  %p190_p11 = por %p189_p10, %p188_p9 }
  0x1b   :  { %v39_v22 = vadd.s32 %v38_v16, %v37_v12  ;;  %v53_v24 = vadd.s32 %v52_v19, %v37_v12  ;;  %v50_v34 = vand.u32 3, %v44_v8  ;;  %v51_v35 = vand.u32 3, %v45_v13 }
  0x1c   :  { %v76_v38 = vrot.slane %v36_v25, %v59_v27  ;;  %v80_v40 = vrot.slane %v36_v25, %v63_v28  ;;  %v84_v42 = vrot.slane %v35_v29, %v59_v27  ;;  %v88_v44 = vrot.slane %v35_v29, %v63_v28  ;;  %p191_p12 = pnand %p190_p11, %p184_p8 }
  0x1d   :  { %v41_v26 = vadd.s32 %v40_v17, %v39_v22  ;;  %v55_v30 = vadd.s32 %v54_v20, %v53_v24  ;;  %v92_v45 = vrot.slane %v34_v31, %v59_v27  ;;  %vm133_vm4 = vcmask 1044480  }
  0x1e   :  { %vm136_vm5 = vcmask 1045504   ;;  %v96_v46 = vrot.slane %v34_v31, %v63_v28  ;;  %v100_v47 = vrot.slane %v51_v35, %v59_v27  ;;  %v104_v49 = vrot.slane %v51_v35, %v63_v28 }
  0x1f   :  { %v42_v32 = vadd.s32 %v41_v26, %v33_v21  ;;  %v56_v36 = vadd.s32 %v55_v30, %v48_v23  ;;  %v108_v51 = vrot.slane %v50_v34, %v59_v27  ;;  %v112_v53 = vrot.slane %v50_v34, %v63_v28 }
  0x20   :  { %v116_v55 = vrot.slane %v49_v33, %v59_v27  ;;  %v120_v57 = vrot.slane %v49_v33, %v63_v28  ;;  %vm139_vm6 = vcmask 1046528  }
  0x21   :  { %v60_v37 = vrot.slane %v42_v32, %v59_v27  ;;  %v64_v39 = vrot.slane %v42_v32, %v63_v28  ;;  %v68_v41 = vrot.slane %v56_v36, %v59_v27  ;;  %v72_v43 = vrot.slane %v56_v36, %v63_v28 }
  0x23   :  { %v122_v48 = vsel %vm121_vm0, %v60_v37, %v68_v41  ;;  %v123_v50 = vsel %vm121_vm0, %v64_v39, %v72_v43 }
  0x24   :  { %v125_v52 = vsel %vm124_vm1, %v122_v48, %v76_v38  ;;  %v126_v54 = vsel %vm124_vm1, %v123_v50, %v80_v40 }
  0x25   :  { %v128_v56 = vsel %vm127_vm2, %v125_v52, %v84_v42  ;;  %v129_v58 = vsel %vm127_vm2, %v126_v54, %v88_v44 }
  0x26   :  { %v131_v59 = vsel %vm130_vm3, %v128_v56, %v92_v45  ;;  %v132_v60 = vsel %vm130_vm3, %v129_v58, %v96_v46 }
  0x27   :  { %v134_v61 = vsel %vm133_vm4, %v131_v59, %v100_v47  ;;  %v135_v62 = vsel %vm133_vm4, %v132_v60, %v104_v49 }
  0x28   :  { %v137_v63 = vsel %vm136_vm5, %v134_v61, %v108_v51  ;;  %v138_v0 = vsel %vm136_vm5, %v135_v62, %v112_v53 }
  0x29   :  { %v140_v1 = vsel %vm139_vm6, %v137_v63, %v116_v55  ;;  %v141_v2 = vsel %vm139_vm6, %v138_v0, %v120_v57 }
  0x2a   :  { %142 = vst [vmem:[#allocation5] sm:$0xff] %v140_v1  ;;  %143 = vst [vmem:[#allocation5 + $0x8] sm:$0xff] %v141_v2 }
  0x2b   :  { %194 = shalt.err (!%p191_p12)
}
  0x2c   :  { %s195_s22 = scalar_lea.hbm %s258_s1, 256 }
  0x2d   :  { %p196_p13 = scmp.ne.s32.totalorder %s258_s1, %s195_s22  ;;  %p199_p0 = scmp.lt.u32.totalorder %s195_s22, %s258_s1 }
  0x2f   :  { %p201_p1 = pnand %p199_p0, %p196_p13 }
  0x31   :  { %204 = shalt.err (!%p201_p1)
}
  0x32   :  { %153 = dma.vmem_to_hbm [thread:$0]  %s151_s18, 256, %s258_s1, [#allocation4]  }
  0x33   :  { %207 = dma.done.wait [#allocation4], 256  }
  0x34   :  { %208 = vsyncadd [#allocation4], 4294967040 }
  0x35   :  { %157 = vsyncpa [#allocation3], 1 }
  0x36   :  { %158 = vsyncpa [#allocation4], 1 }

</bundles_post_ra>
